<compile_context>
chip_gen: v7x
topology: tpu7x:2x2x1
jax: 0.10.0
libtpu: 0.0.40
codegen_flags: <defaults>
</compile_context>

<pallas_src>
import jax
import jax.numpy as jnp
from jax.experimental import pallas as pl
from jax.experimental.pallas import tpu as pltpu


HEAD_PAD = 128  # lane-dense padded head width


def _round_up(x, m):
    return (x + m - 1) // m * m


def _fused_mlp_kernel(tok_ref, rsel_ref, wf_ref, c1_ref, w2_ref, c2_ref,
                      w3_ref, b3_ref, out_ref):
    tok = tok_ref[...]                                    # [TB, S] int32
    S = tok.shape[1]
    SV = rsel_ref.shape[1]
    V = SV // S

    # Build the [TB, S*V] one-hot of column index j = s*V + token[b, s]:
    #   code[b, s]      = s*V + token[b, s]
    #   expanded[b, j]  = code[b, s_of_j]          (tiny MXU matmul, lane-dense out)
    #   onehot[b, j]    = (expanded[b, j] == j)
    pos = jax.lax.broadcasted_iota(jnp.int32, tok.shape, 1)          # [TB, S]
    code = (tok + V * pos).astype(jnp.float32)                       # [TB, S]
    expanded = jnp.dot(code, rsel_ref[...],
                       preferred_element_type=jnp.float32)           # [TB, S*V]
    col = jax.lax.broadcasted_iota(jnp.int32, expanded.shape, 1).astype(jnp.float32)
    onehot = (expanded == col).astype(jnp.float32)                   # [TB, S*V]

    # Layer 1: fused (embedding + flatten + Linear1 + folded BN) + ReLU.
    h1 = jnp.dot(onehot, wf_ref[...], preferred_element_type=jnp.float32)
    h1 = jnp.maximum(h1 + c1_ref[...], 0.0)                          # [TB, 256]

    # Layer 2: Linear + folded BN + ReLU.
    h2 = jnp.dot(h1, w2_ref[...], preferred_element_type=jnp.float32)
    h2 = jnp.maximum(h2 + c2_ref[...], 0.0)                          # [TB, 64]

    # Head: plain Linear, zero-padded to 128 lanes (unmasked stores).
    out_ref[...] = (jnp.dot(h2, w3_ref[...], preferred_element_type=jnp.float32)
                    + b3_ref[...])                                   # [TB, 128]


def prepare_fused_params(params, seq_max_len, emb_dim, vocab_size):
    """Fold BN into weights, fuse embedding into Linear1, pad the head (JAX, one-time)."""
    S, E, V = seq_max_len, emb_dim, vocab_size

    # Fold BN (eval) into Linear1 / Linear2.
    w1f = params["w1"] * params["s1"]                         # [S*E, H1]
    c1 = params["b1"] * params["s1"] + params["t1"]           # [1, H1]
    w2f = params["w2"] * params["s2"]                         # [H1, H2]
    c2 = params["b2"] * params["s2"] + params["t2"]           # [1, H2]

    # Fuse embedding + flatten into Linear1: Wf[s*V + v, :] = emb[v, :] @ W1'[s*E:(s+1)*E, :]
    h1 = w1f.shape[1]
    w1_3 = w1f.reshape(S, E, h1)                              # [S, E, H1]
    wf = jnp.einsum("ve,seh->svh", params["emb"], w1_3).reshape(S * V, h1)

    # Pad head to a lane-dense width.
    nc = params["w3"].shape[1]
    w3p = jnp.zeros((params["w3"].shape[0], HEAD_PAD), jnp.float32).at[:, :nc].set(params["w3"])
    b3p = jnp.zeros((1, HEAD_PAD), jnp.float32).at[:, :nc].set(params["b3"])

    # Position-replication matrix: rsel[s, j] = 1 if j // V == s.
    s_idx = jnp.arange(S, dtype=jnp.int32)[:, None]
    j_idx = jnp.arange(S * V, dtype=jnp.int32)[None, :]
    rsel = (j_idx // V == s_idx).astype(jnp.float32)          # [S, S*V]

    return dict(rsel=rsel, wf=wf, c1=c1, w2=w2f, c2=c2, w3=w3p, b3=b3p,
                num_classes=nc)


def baseline_mlp_forward(tokens, fused, tile_b=None):
    """tokens: int32 [B, S]. Returns f32 [B, num_classes]."""
    B, S = tokens.shape
    nc = fused["num_classes"]

    if tile_b is None:
        tile_b = min(256, _round_up(B, 8))
    Bp = _round_up(B, tile_b)
    tok_p = jnp.zeros((Bp, S), jnp.int32).at[:B].set(tokens.astype(jnp.int32))

    rsel, wf, c1, w2, c2, w3, b3 = (fused["rsel"], fused["wf"], fused["c1"],
                                    fused["w2"], fused["c2"], fused["w3"], fused["b3"])

    resident = lambda shape: pl.BlockSpec(shape, lambda i: (0, 0))

    out = pl.pallas_call(
        _fused_mlp_kernel,
        out_shape=jax.ShapeDtypeStruct((Bp, HEAD_PAD), jnp.float32),
        grid=(Bp // tile_b,),
        in_specs=[
            pl.BlockSpec((tile_b, S), lambda i: (i, 0)),   # tokens: tiled over batch
            resident(rsel.shape),                          # weights stay VMEM-resident
            resident(wf.shape),
            resident(c1.shape),
            resident(w2.shape),
            resident(c2.shape),
            resident(w3.shape),
            resident(b3.shape),
        ],
        out_specs=pl.BlockSpec((tile_b, HEAD_PAD), lambda i: (i, 0)),
        compiler_params=pltpu.CompilerParams(
            dimension_semantics=("parallel",)),
    )(tok_p, rsel, wf, c1, w2, c2, w3, b3)

    return out[:B, :nc]


def init_params(key, emb_dim, seq_max_len, layers=(256, 64, 2),
                vocab_size=30, padding_idx=25, bn_eps=1e-5):
    d0 = emb_dim * seq_max_len
    dims = [d0] + list(layers)
    keys = jax.random.split(key, 16)
    ki = iter(range(16))

    emb = 0.1 * jax.random.normal(keys[next(ki)], (vocab_size, emb_dim), jnp.float32)
    emb = emb.at[padding_idx].set(0.0)                   # padding_idx row is zero

    def linear(kw, kb, din, dout):
        bound = 1.0 / jnp.sqrt(din)
        w = jax.random.uniform(kw, (din, dout), jnp.float32, -bound, bound)
        b = jax.random.uniform(kb, (1, dout), jnp.float32, -bound, bound)
        return w, b

    w1, b1 = linear(keys[next(ki)], keys[next(ki)], dims[0], dims[1])
    w2, b2 = linear(keys[next(ki)], keys[next(ki)], dims[1], dims[2])
    w3, b3 = linear(keys[next(ki)], keys[next(ki)], dims[2], dims[3])

    def bn_fold(kg, kb, km, kv, n):
        gamma = 1.0 + 0.05 * jax.random.normal(kg, (1, n), jnp.float32)
        beta = 0.05 * jax.random.normal(kb, (1, n), jnp.float32)
        mean = 0.05 * jax.random.normal(km, (1, n), jnp.float32)
        var = 1.0 + 0.1 * jax.random.uniform(kv, (1, n), jnp.float32)
        scale = gamma / jnp.sqrt(var + bn_eps)
        shift = beta - mean * scale
        return scale, shift

    s1, t1 = bn_fold(keys[next(ki)], keys[next(ki)], keys[next(ki)], keys[next(ki)], dims[1])
    s2, t2 = bn_fold(keys[next(ki)], keys[next(ki)], keys[next(ki)], keys[next(ki)], dims[2])

    return dict(emb=emb, w1=w1, b1=b1, s1=s1, t1=t1,
                w2=w2, b2=b2, s2=s2, t2=t2, w3=w3, b3=b3)


def reference_forward(tokens, params):
    """Unfused pure-JAX reference: Embedding -> Flatten -> (Linear, BN-eval, ReLU)x2 -> Linear."""
    x = params["emb"][tokens]                            # [B, S, E]
    x = x.reshape(tokens.shape[0], -1)
    h1 = jnp.maximum((x @ params["w1"] + params["b1"]) * params["s1"] + params["t1"], 0.0)
    h2 = jnp.maximum((h1 @ params["w2"] + params["b2"]) * params["s2"] + params["t2"], 0.0)
    return h2 @ params["w3"] + params["b3"]


if __name__ == "__main__":
    emb_dim, seq_max_len = 8, 16          # flattened input dim = 128
    vocab_size, padding_idx = 30, 25
    batch = 2

    key = jax.random.PRNGKey(0)
    k_tok, k_par = jax.random.split(key)
    tokens = jax.random.randint(k_tok, (batch, seq_max_len), 0, vocab_size, jnp.int32)
    params = init_params(k_par, emb_dim, seq_max_len,
                         layers=(256, 64, 2),
                         vocab_size=vocab_size, padding_idx=padding_idx)

    fused = prepare_fused_params(params, seq_max_len, emb_dim, vocab_size)
    fused = jax.tree_util.tree_map(
        lambda x: jax.block_until_ready(x) if isinstance(x, jax.Array) else x, fused)

    out = baseline_mlp_forward(tokens, fused)
    out = jax.block_until_ready(out)

    ref = reference_forward(tokens, params)
    assert out.shape == (batch, 2)
    assert jnp.allclose(out, ref, atol=1e-4, rtol=1e-4), "mismatch vs JAX reference"
    print("KERNEL_OK")
</pallas_src>

<mosaic_0001>
module attributes {stable_mosaic.version = 11 : i64} {
  func.func @_fused_mlp_kernel(%arg0: i32, %arg1: memref<8x16xi32, #tpu.memory_space<vmem>>, %arg2: memref<16x480xf32, #tpu.memory_space<vmem>>, %arg3: memref<480x256xf32, #tpu.memory_space<vmem>>, %arg4: memref<1x256xf32, #tpu.memory_space<vmem>>, %arg5: memref<256x64xf32, #tpu.memory_space<vmem>>, %arg6: memref<1x64xf32, #tpu.memory_space<vmem>>, %arg7: memref<64x128xf32, #tpu.memory_space<vmem>>, %arg8: memref<1x128xf32, #tpu.memory_space<vmem>>, %arg9: memref<8x128xf32, #tpu.memory_space<vmem>>) attributes {dimension_semantics = [#tpu.dimension_semantics<parallel>], iteration_bounds = array<i64: 1>, scalar_prefetch = 0 : i64, scratch_operands = 0 : i64, tpu.core_type = #tpu.core_type<tc>, window_params = [{transform_indices = @transform_0, window_bounds = array<i64: 8, 16>}, {pipeline_mode = #tpu.pipeline_mode<synchronous>, transform_indices = @transform_1, window_bounds = array<i64: 16, 480>}, {pipeline_mode = #tpu.pipeline_mode<synchronous>, transform_indices = @transform_2, window_bounds = array<i64: 480, 256>}, {pipeline_mode = #tpu.pipeline_mode<synchronous>, transform_indices = @transform_3, window_bounds = array<i64: 1, 256>}, {pipeline_mode = #tpu.pipeline_mode<synchronous>, transform_indices = @transform_4, window_bounds = array<i64: 256, 64>}, {pipeline_mode = #tpu.pipeline_mode<synchronous>, transform_indices = @transform_5, window_bounds = array<i64: 1, 64>}, {pipeline_mode = #tpu.pipeline_mode<synchronous>, transform_indices = @transform_6, window_bounds = array<i64: 64, 128>}, {pipeline_mode = #tpu.pipeline_mode<synchronous>, transform_indices = @transform_7, window_bounds = array<i64: 1, 128>}, {transform_indices = @transform_8, window_bounds = array<i64: 8, 128>}]} {
    %c0 = arith.constant 0 : index
    %c0_0 = arith.constant 0 : index
    %0 = vector.load %arg1[%c0, %c0_0] : memref<8x16xi32, #tpu.memory_space<vmem>>, vector<8x16xi32>
    %1 = tpu.iota {dimensions = array<i32: 1>} : vector<8x16xi32>
    %c30_i32 = arith.constant 30 : i32
    %2 = vector.broadcast %c30_i32 : i32 to vector<8x16xi32>
    %3 = arith.muli %2, %1 : vector<8x16xi32>
    %4 = arith.addi %0, %3 : vector<8x16xi32>
    %5 = arith.sitofp %4 : vector<8x16xi32> to vector<8x16xf32>
    %c0_1 = arith.constant 0 : index
    %c0_2 = arith.constant 0 : index
    %6 = vector.load %arg2[%c0_1, %c0_2] : memref<16x480xf32, #tpu.memory_space<vmem>>, vector<16x480xf32>
    %cst = arith.constant dense<0.000000e+00> : vector<8x480xf32>
    %7 = tpu.matmul %5, %6, %cst {dimension_numbers = #tpu.dot_dimension_numbers<[1], [0], [0], [1], [0, 0, 1, 1], [], []>} : vector<8x16xf32>, vector<16x480xf32>, vector<8x480xf32> -> vector<8x480xf32>
    %8 = tpu.iota {dimensions = array<i32: 1>} : vector<8x480xi32>
    %9 = arith.sitofp %8 : vector<8x480xi32> to vector<8x480xf32>
    %10 = arith.cmpf oeq, %7, %9 : vector<8x480xf32>
    %11 = arith.extui %10 : vector<8x480xi1> to vector<8x480xi32>
    %12 = arith.sitofp %11 : vector<8x480xi32> to vector<8x480xf32>
    %c0_3 = arith.constant 0 : index
    %c0_4 = arith.constant 0 : index
    %13 = vector.load %arg3[%c0_3, %c0_4] : memref<480x256xf32, #tpu.memory_space<vmem>>, vector<480x256xf32>
    %cst_5 = arith.constant dense<0.000000e+00> : vector<8x256xf32>
    %14 = tpu.matmul %12, %13, %cst_5 {dimension_numbers = #tpu.dot_dimension_numbers<[1], [0], [0], [1], [0, 0, 1, 1], [], []>} : vector<8x480xf32>, vector<480x256xf32>, vector<8x256xf32> -> vector<8x256xf32>
    %c0_6 = arith.constant 0 : index
    %c0_7 = arith.constant 0 : index
    %15 = vector.load %arg4[%c0_6, %c0_7] : memref<1x256xf32, #tpu.memory_space<vmem>>, vector<1x256xf32>
    %16 = vector.broadcast %15 : vector<1x256xf32> to vector<8x256xf32>
    %17 = arith.addf %14, %16 : vector<8x256xf32>
    %cst_8 = arith.constant 0.000000e+00 : f32
    %18 = vector.broadcast %cst_8 : f32 to vector<8x256xf32>
    %19 = arith.maximumf %17, %18 : vector<8x256xf32>
    %c0_9 = arith.constant 0 : index
    %c0_10 = arith.constant 0 : index
    %20 = vector.load %arg5[%c0_9, %c0_10] : memref<256x64xf32, #tpu.memory_space<vmem>>, vector<256x64xf32>
    %cst_11 = arith.constant dense<0.000000e+00> : vector<8x64xf32>
    %21 = tpu.matmul %19, %20, %cst_11 {dimension_numbers = #tpu.dot_dimension_numbers<[1], [0], [0], [1], [0, 0, 1, 1], [], []>} : vector<8x256xf32>, vector<256x64xf32>, vector<8x64xf32> -> vector<8x64xf32>
    %c0_12 = arith.constant 0 : index
    %c0_13 = arith.constant 0 : index
    %22 = vector.load %arg6[%c0_12, %c0_13] : memref<1x64xf32, #tpu.memory_space<vmem>>, vector<1x64xf32>
    %23 = vector.broadcast %22 : vector<1x64xf32> to vector<8x64xf32>
    %24 = arith.addf %21, %23 : vector<8x64xf32>
    %cst_14 = arith.constant 0.000000e+00 : f32
    %25 = vector.broadcast %cst_14 : f32 to vector<8x64xf32>
    %26 = arith.maximumf %24, %25 : vector<8x64xf32>
    %c0_15 = arith.constant 0 : index
    %c0_16 = arith.constant 0 : index
    %27 = vector.load %arg7[%c0_15, %c0_16] : memref<64x128xf32, #tpu.memory_space<vmem>>, vector<64x128xf32>
    %cst_17 = arith.constant dense<0.000000e+00> : vector<8x128xf32>
    %28 = tpu.matmul %26, %27, %cst_17 {dimension_numbers = #tpu.dot_dimension_numbers<[1], [0], [0], [1], [0, 0, 1, 1], [], []>} : vector<8x64xf32>, vector<64x128xf32>, vector<8x128xf32> -> vector<8x128xf32>
    %c0_18 = arith.constant 0 : index
    %c0_19 = arith.constant 0 : index
    %29 = vector.load %arg8[%c0_18, %c0_19] : memref<1x128xf32, #tpu.memory_space<vmem>>, vector<1x128xf32>
    %30 = vector.broadcast %29 : vector<1x128xf32> to vector<8x128xf32>
    %31 = arith.addf %28, %30 : vector<8x128xf32>
    %c0_20 = arith.constant 0 : index
    %c0_21 = arith.constant 0 : index
    %32 = vector.load %arg9[%c0_20, %c0_21] : memref<8x128xf32, #tpu.memory_space<vmem>>, vector<8x128xf32>
    tpu.vector_store %arg9[%c0_20, %c0_21], %31 {strides = array<i32>} : memref<8x128xf32, #tpu.memory_space<vmem>>, vector<8x128xf32>,
    return
  }
  func.func @transform_0(%arg0: i32) -> (i32, i32) {
    %c0_i32 = arith.constant 0 : i32
    %c0_i32_0 = arith.constant 0 : i32
    return %arg0, %c0_i32 : i32, i32
  }
  func.func @transform_1(%arg0: i32) -> (i32, i32) {
    %c0_i32 = arith.constant 0 : i32
    %c0_i32_0 = arith.constant 0 : i32
    %c0_i32_1 = arith.constant 0 : i32
    return %c0_i32, %c0_i32_0 : i32, i32
  }
  func.func @transform_2(%arg0: i32) -> (i32, i32) {
    %c0_i32 = arith.constant 0 : i32
    %c0_i32_0 = arith.constant 0 : i32
    %c0_i32_1 = arith.constant 0 : i32
    return %c0_i32, %c0_i32_0 : i32, i32
  }
  func.func @transform_3(%arg0: i32) -> (i32, i32) {
    %c0_i32 = arith.constant 0 : i32
    %c0_i32_0 = arith.constant 0 : i32
    %c0_i32_1 = arith.constant 0 : i32
    return %c0_i32, %c0_i32_0 : i32, i32
  }
  func.func @transform_4(%arg0: i32) -> (i32, i32) {
    %c0_i32 = arith.constant 0 : i32
    %c0_i32_0 = arith.constant 0 : i32
    %c0_i32_1 = arith.constant 0 : i32
    return %c0_i32, %c0_i32_0 : i32, i32
  }
  func.func @transform_5(%arg0: i32) -> (i32, i32) {
    %c0_i32 = arith.constant 0 : i32
    %c0_i32_0 = arith.constant 0 : i32
    %c0_i32_1 = arith.constant 0 : i32
    return %c0_i32, %c0_i32_0 : i32, i32
  }
  func.func @transform_6(%arg0: i32) -> (i32, i32) {
    %c0_i32 = arith.constant 0 : i32
    %c0_i32_0 = arith.constant 0 : i32
    %c0_i32_1 = arith.constant 0 : i32
    return %c0_i32, %c0_i32_0 : i32, i32
  }
  func.func @transform_7(%arg0: i32) -> (i32, i32) {
    %c0_i32 = arith.constant 0 : i32
    %c0_i32_0 = arith.constant 0 : i32
    %c0_i32_1 = arith.constant 0 : i32
    return %c0_i32, %c0_i32_0 : i32, i32
  }
  func.func @transform_8(%arg0: i32) -> (i32, i32) {
    %c0_i32 = arith.constant 0 : i32
    %c0_i32_0 = arith.constant 0 : i32
    return %arg0, %c0_i32 : i32, i32
  }
}

</mosaic_0001>

<bundles_post_ra>
// kernel: tpu_custom_call.1
= control target key start
LH: loop header
LB: loop body
LE: loop exit
PB: predicated region body
PF: predicated region fallthrough
CT: control target
= control target key end

     0   :  { %13 = vsyncpa [#allocation3], 0  ;;  %s1274_s0 = inlined_call_operand.vmem [shape: s32[8,16], index: 0, kind: input, shape index: {}]   ;;  %s1275_s1 = inlined_call_operand.vmem [shape: f32[16,480], index: 1, kind: input, shape index: {}]   ;;  %s1276_s2 = inlined_call_operand.hbm [shape: f32[480,256], index: 2, kind: input, shape index: {}]   ;;  %s1277_s3 = inlined_call_operand.vmem [shape: f32[1,256], index: 3, kind: input, shape index: {}]   ;;  %s1278_s4 = inlined_call_operand.vmem [shape: f32[256,64], index: 4, kind: input, shape index: {}]   ;;  %s1279_s5 = inlined_call_operand.vmem [shape: f32[1,64], index: 5, kind: input, shape index: {}]   ;;  %s1280_s6 = inlined_call_operand.vmem [shape: f32[64,128], index: 6, kind: input, shape index: {}]   ;;  %s1281_s7 = inlined_call_operand.vmem [shape: f32[1,128], index: 7, kind: input, shape index: {}]   ;;  %s1282_s8 = inlined_call_operand.hbm [shape: f32[8,128], index: 8, kind: output, shape index: {}]  }
   0x1   :  { %14 = vsyncpa [#allocation4], 0  ;;  %s1026_s27 = smov [#allocation2]   ;;  %s978_s9 = scalar_lea.hbm %s1276_s2, 15360 }
   0x2   :  { %s24_s28 = sshll.u32 %s1026_s27, 4  ;;  %p979_p0 = scmp.ne.s32.totalorder %s1276_s2, %s978_s9  ;;  %s25_s28 = int_to_ptr.vmem [resolvable:$true] %s24_s28 }
   0x3   :  { %p982_p1 = scmp.lt.u32.totalorder %s978_s9, %s1276_s2 }
   0x5   :  { %p984_p2 = pnand %p982_p1, %p979_p0 }
   0x7   :  { %987 = shalt.err (!%p984_p2)
}
   0x8   :  { %s988_s14 = scalar_lea.vmem %s25_s28, 15360  ;;  %p993_p4 = scmp.lt.s32.totalorder %s25_s28, %s25_s28 }
   0x9   :  { %p989_p3 = scmp.ne.s32.totalorder %s25_s28, %s988_s14  ;;  %p994_p5 = scmp.lt.s32.totalorder %s988_s14, %s988_s14 }
   0xb   :  { %p995_p6 = por %p994_p5, %p993_p4 }
   0xd   :  { %p996_p7 = pnand %p995_p6, %p989_p3 }
   0xf   :  { %999 = shalt.err (!%p996_p7)
}
  0x10   :  { %s1027_s15 = smov 256   ;;  %s1028_s16 = smov 16  }
  0x11   :  { %30 = dma.hbm_to_vmem [thread:$0]  %s1276_s2, 15360, %s25_s28, [#allocation3], %s1027_s15, %s1027_s15, %s1028_s16  }
  0x12   :  { %1022 = dma.done.wait [#allocation3], 15360  }
  0x13   :  { %1023 = vsyncadd [#allocation3], 4294951936  ;;  %v45_v0 = vlaneseq  ;;  %v1029_v1 = vmov 0.0   ;;  %v51_v4 = vld [vmem:[%s1275_s1 + $0x8] sm:$0xff]  ;;  %v50_v6 = vld [vmem:[%s1275_s1] sm:$0xff]  ;;  %vm58_vm0 = vcmask 130048  }
  0x14   :  { %126 = vmatprep.mubr.f32.mxu0 %v1029_v1  ;;  %v55_v5 = vld [vmem:[%s1275_s1 + $0x28] sm:$0xff]  ;;  %v54_v8 = vld [vmem:[%s1275_s1 + $0x20] sm:$0xff]  ;;  %v53_v10 = vld [vmem:[%s1275_s1 + $0x18] sm:$0xff]  ;;  %vm355_vm3 = vcmask 785408   ;;  %vm1032_vm6 = vmmov 0   ;;  %vm628_vm7 = vcmask 523264  }
  0x15   :  { %v1093_v2 = vand.u32 127, %v45_v0  ;;  %v794_v7 = vpack.c.bf16 %v55_v5, %v51_v4  ;;  %v44_v9 = vld [vmem:[%s1274_s0] sm:$0xff]  ;;  %v796_v11 = vpack.c.bf16 %v54_v8, %v50_v6  ;;  %v57_v13 = vld [vmem:[%s1275_s1 + $0x38] sm:$0xff]  ;;  %v52_v14 = vld [vmem:[%s1275_s1 + $0x10] sm:$0xff] }
  0x16   :  { %v56_v15 = vld [vmem:[%s1275_s1 + $0x30] sm:$0xff]  ;;  %v798_v16 = vpack.c.bf16 %v57_v13, %v53_v10  ;;  %v224_v17 = vld [vmem:[#allocation2 + $0x8] sm:$0xff]  ;;  %v226_v18 = vld [vmem:[#allocation2 + $0x18] sm:$0xff] }
  0x17   :  { %v47_v3 = vmul.u32 30, %v1093_v2  ;;  %795 = vmatprep.subr.bf16.mxu0 %v794_v7  ;;  %v800_v20 = vpack.c.bf16 %v56_v15, %v52_v14  ;;  %v802_v21 = vpack.c.bf16 %v226_v18, %v224_v17  ;;  %v223_v22 = vld [vmem:[#allocation2] sm:$0xff]  ;;  %v225_v23 = vld [vmem:[#allocation2 + $0x10] sm:$0xff]  ;;  %v228_v24 = vld [vmem:[#allocation2 + $0x28] sm:$0xff] }
  0x18   :  { %797 = vmatpush1.bf16.msra.mxu0 %v796_v11  ;;  %v230_v25 = vld [vmem:[#allocation2 + $0x38] sm:$0xff]  ;;  %v804_v26 = vpack.c.bf16 %v225_v23, %v223_v22  ;;  %v227_v27 = vld [vmem:[#allocation2 + $0x20] sm:$0xff]  ;;  %v288_v28 = vld [vmem:[#allocation2 + $0x208] sm:$0xff] }
  0x19   :  { %v48_v12 = vadd.s32 %v47_v3, %v44_v9  ;;  %799 = vmatprep.subr.bf16.mxu0 %v798_v16  ;;  %v290_v29 = vld [vmem:[#allocation2 + $0x218] sm:$0xff]  ;;  %v806_v30 = vpack.c.bf16 %v230_v25, %v228_v24  ;;  %v229_v31 = vld [vmem:[#allocation2 + $0x30] sm:$0xff]  ;;  %v287_v33 = vld [vmem:[#allocation2 + $0x200] sm:$0xff] }
  0x1a   :  { %v866_v32 = vpack.c.bf16 %v290_v29, %v288_v28  ;;  %v289_v34 = vld [vmem:[#allocation2 + $0x210] sm:$0xff]  ;;  %v232_v35 = vld [vmem:[#allocation2 + $0x48] sm:$0xff]  ;;  %v234_v36 = vld [vmem:[#allocation2 + $0x58] sm:$0xff]  ;;  %v808_v41 = vpack.c.bf16 %v229_v31, %v227_v27 }
  0x1b   :  { %v49_v19 = vcvt.s32.f32 %v48_v12  ;;  %v868_v37 = vpack.c.bf16 %v289_v34, %v287_v33  ;;  %v292_v38 = vld [vmem:[#allocation2 + $0x228] sm:$0xff]  ;;  %v294_v39 = vld [vmem:[#allocation2 + $0x238] sm:$0xff]  ;;  %v291_v40 = vld [vmem:[#allocation2 + $0x220] sm:$0xff]  ;;  %v810_v46 = vpack.c.bf16 %v234_v36, %v232_v35 }
  0x1c   :  { %867 = vmatprep.subr.bf16.mxu1 %v866_v32  ;;  %v231_v42 = vld [vmem:[#allocation2 + $0x40] sm:$0xff]  ;;  %v233_v43 = vld [vmem:[#allocation2 + $0x50] sm:$0xff]  ;;  %v870_v44 = vpack.c.bf16 %v294_v39, %v292_v38  ;;  %v236_v47 = vld [vmem:[#allocation2 + $0x68] sm:$0xff] }
  0x1d   :  { %718 = vmatmul.mubr.msk.f32.vlgmr.msra.gmra.mrb[0].mxu0 %vm58_vm0, %v49_v19  ;;  %869 = vmatpush1.bf16.msra.mxu1 %v868_v37  ;;  %v293_v45 = vld [vmem:[#allocation2 + $0x230] sm:$0xff]  ;;  %v238_v48 = vld [vmem:[#allocation2 + $0x78] sm:$0xff]  ;;  %v296_v50 = vld [vmem:[#allocation2 + $0x248] sm:$0xff]  ;;  %v812_v55 = vpack.c.bf16 %v233_v43, %v231_v42 }
  0x1e   :  { %801 = vmatpush1.bf16.msra.mxu0 %v800_v20  ;;  %197 = vmatprep.mubr.f32.mxu0 %v1029_v1  ;;  %v872_v49 = vpack.c.bf16 %v293_v45, %v291_v40  ;;  %v298_v51 = vld [vmem:[#allocation2 + $0x258] sm:$0xff]  ;;  %v295_v52 = vld [vmem:[#allocation2 + $0x240] sm:$0xff]  ;;  %v297_v53 = vld [vmem:[#allocation2 + $0x250] sm:$0xff]  ;;  %v814_v60 = vpack.c.bf16 %v238_v48, %v236_v47 }
  0x1f   :  { %803 = vmatprep.subr.bf16.mxu0 %v802_v21  ;;  %871 = vmatprep.subr.bf16.mxu1 %v870_v44  ;;  %v874_v54 = vpack.c.bf16 %v298_v51, %v296_v50  ;;  %v235_v56 = vld [vmem:[#allocation2 + $0x60] sm:$0xff]  ;;  %v876_v57 = vpack.c.bf16 %v297_v53, %v295_v52  ;;  %v300_v58 = vld [vmem:[#allocation2 + $0x268] sm:$0xff]  ;;  %v302_v59 = vld [vmem:[#allocation2 + $0x278] sm:$0xff] }
  0x20   :  { %v237_v61 = vld [vmem:[#allocation2 + $0x70] sm:$0xff]  ;;  %v878_v62 = vpack.c.bf16 %v302_v59, %v300_v58  ;;  %v299_v63 = vld [vmem:[#allocation2 + $0x260] sm:$0xff]  ;;  %v240_v4 = vld [vmem:[#allocation2 + $0x88] sm:$0xff] }
  0x21   :  { %719 = vmatmul.mubr.msk.f32.vlgmr.msra.gmra.mrb[2].mxu0 %vm58_vm0, %v49_v19  ;;  %873 = vmatpush1.bf16.msra.mxu1 %v872_v49  ;;  %v301_v3 = vld [vmem:[#allocation2 + $0x270] sm:$0xff]  ;;  %v242_v5 = vld [vmem:[#allocation2 + $0x98] sm:$0xff]  ;;  %v304_v6 = vld [vmem:[#allocation2 + $0x288] sm:$0xff]  ;;  %v816_v8 = vpack.c.bf16 %v237_v61, %v235_v56 }
  0x22   :  { %805 = vmatpush1.bf16.msra.mxu0 %v804_v26  ;;  %875 = vmatprep.subr.bf16.mxu1 %v874_v54  ;;  %v306_v7 = vld [vmem:[#allocation2 + $0x298] sm:$0xff]  ;;  %v239_v9 = vld [vmem:[#allocation2 + $0x80] sm:$0xff]  ;;  %v241_v10 = vld [vmem:[#allocation2 + $0x90] sm:$0xff]  ;;  %v880_v11 = vpack.c.bf16 %v301_v3, %v299_v63  ;;  %v818_v12 = vpack.c.bf16 %v242_v5, %v240_v4 }
  0x23   :  { %807 = vmatprep.subr.bf16.mxu0 %v806_v30  ;;  %v244_v13 = vld [vmem:[#allocation2 + $0xa8] sm:$0xff]  ;;  %v882_v14 = vpack.c.bf16 %v306_v7, %v304_v6  ;;  %v303_v15 = vld [vmem:[#allocation2 + $0x280] sm:$0xff]  ;;  %v305_v16 = vld [vmem:[#allocation2 + $0x290] sm:$0xff]  ;;  %v820_v20 = vpack.c.bf16 %v241_v10, %v239_v9 }
  0x24   :  { %v246_v17 = vld [vmem:[#allocation2 + $0xb8] sm:$0xff]  ;;  %v308_v18 = vld [vmem:[#allocation2 + $0x2a8] sm:$0xff]  ;;  %v243_v21 = vld [vmem:[#allocation2 + $0xa0] sm:$0xff]  ;;  %v884_v23 = vpack.c.bf16 %v305_v16, %v303_v15 }
  0x25   :  { %877 = vmatpush1.bf16.msra.mxu1 %v876_v57  ;;  %v310_v19 = vld [vmem:[#allocation2 + $0x2b8] sm:$0xff]  ;;  %v245_v22 = vld [vmem:[#allocation2 + $0xb0] sm:$0xff]  ;;  %v822_v24 = vpack.c.bf16 %v246_v17, %v244_v13  ;;  %v248_v25 = vld [vmem:[#allocation2 + $0xc8] sm:$0xff] }
  0x26   :  { %809 = vmatpush1.bf16.msra.mxu0 %v808_v41  ;;  %879 = vmatprep.subr.bf16.mxu1 %v878_v62  ;;  %v886_v26 = vpack.c.bf16 %v310_v19, %v308_v18  ;;  %v307_v27 = vld [vmem:[#allocation2 + $0x2a0] sm:$0xff]  ;;  %v309_v28 = vld [vmem:[#allocation2 + $0x2b0] sm:$0xff]  ;;  %v250_v29 = vld [vmem:[#allocation2 + $0xd8] sm:$0xff]  ;;  %v824_v32 = vpack.c.bf16 %v245_v22, %v243_v21 }
  0x27   :  { %811 = vmatprep.subr.bf16.mxu0 %v810_v46  ;;  %v312_v30 = vld [vmem:[#allocation2 + $0x2c8] sm:$0xff]  ;;  %v314_v31 = vld [vmem:[#allocation2 + $0x2d8] sm:$0xff]  ;;  %v247_v33 = vld [vmem:[#allocation2 + $0xc0] sm:$0xff]  ;;  %v888_v35 = vpack.c.bf16 %v309_v28, %v307_v27  ;;  %v826_v36 = vpack.c.bf16 %v250_v29, %v248_v25 }
  0x28   :  { %v249_v34 = vld [vmem:[#allocation2 + $0xd0] sm:$0xff]  ;;  %v252_v37 = vld [vmem:[#allocation2 + $0xe8] sm:$0xff]  ;;  %v890_v38 = vpack.c.bf16 %v314_v31, %v312_v30  ;;  %v311_v39 = vld [vmem:[#allocation2 + $0x2c0] sm:$0xff] }
  0x29   :  { %881 = vmatpush1.bf16.msra.mxu1 %v880_v11  ;;  %v313_v40 = vld [vmem:[#allocation2 + $0x2d0] sm:$0xff]  ;;  %v254_v41 = vld [vmem:[#allocation2 + $0xf8] sm:$0xff]  ;;  %v316_v42 = vld [vmem:[#allocation2 + $0x2e8] sm:$0xff]  ;;  %v828_v44 = vpack.c.bf16 %v249_v34, %v247_v33 }
  0x2a   :  { %813 = vmatpush1.bf16.msra.mxu0 %v812_v55  ;;  %883 = vmatprep.subr.bf16.mxu1 %v882_v14  ;;  %v318_v43 = vld [vmem:[#allocation2 + $0x2f8] sm:$0xff]  ;;  %v251_v45 = vld [vmem:[#allocation2 + $0xe0] sm:$0xff]  ;;  %v253_v46 = vld [vmem:[#allocation2 + $0xf0] sm:$0xff]  ;;  %v892_v47 = vpack.c.bf16 %v313_v40, %v311_v39  ;;  %v830_v48 = vpack.c.bf16 %v254_v41, %v252_v37 }
  0x2b   :  { %815 = vmatprep.subr.bf16.mxu0 %v814_v60  ;;  %v256_v49 = vld [vmem:[#allocation2 + $0x108] sm:$0xff]  ;;  %v894_v50 = vpack.c.bf16 %v318_v43, %v316_v42  ;;  %v315_v51 = vld [vmem:[#allocation2 + $0x2e0] sm:$0xff]  ;;  %v317_v52 = vld [vmem:[#allocation2 + $0x2f0] sm:$0xff]  ;;  %v832_v56 = vpack.c.bf16 %v253_v46, %v251_v45 }
  0x2c   :  { %v258_v53 = vld [vmem:[#allocation2 + $0x118] sm:$0xff]  ;;  %v320_v54 = vld [vmem:[#allocation2 + $0x308] sm:$0xff]  ;;  %v255_v57 = vld [vmem:[#allocation2 + $0x100] sm:$0xff]  ;;  %v896_v59 = vpack.c.bf16 %v317_v52, %v315_v51 }
  0x2d   :  { %885 = vmatpush1.bf16.msra.mxu1 %v884_v23  ;;  %v322_v55 = vld [vmem:[#allocation2 + $0x318] sm:$0xff]  ;;  %v257_v58 = vld [vmem:[#allocation2 + $0x110] sm:$0xff]  ;;  %v834_v60 = vpack.c.bf16 %v258_v53, %v256_v49  ;;  %v260_v61 = vld [vmem:[#allocation2 + $0x128] sm:$0xff] }
  0x2e   :  { %817 = vmatpush1.bf16.msra.mxu0 %v816_v8  ;;  %887 = vmatprep.subr.bf16.mxu1 %v886_v26  ;;  %v898_v62 = vpack.c.bf16 %v322_v55, %v320_v54  ;;  %v319_v63 = vld [vmem:[#allocation2 + $0x300] sm:$0xff]  ;;  %v321_v3 = vld [vmem:[#allocation2 + $0x310] sm:$0xff]  ;;  %v262_v4 = vld [vmem:[#allocation2 + $0x138] sm:$0xff]  ;;  %v836_v7 = vpack.c.bf16 %v257_v58, %v255_v57 }
  0x2f   :  { %819 = vmatprep.subr.bf16.mxu0 %v818_v12  ;;  %v324_v5 = vld [vmem:[#allocation2 + $0x328] sm:$0xff]  ;;  %v326_v6 = vld [vmem:[#allocation2 + $0x338] sm:$0xff]  ;;  %v259_v8 = vld [vmem:[#allocation2 + $0x120] sm:$0xff]  ;;  %v900_v10 = vpack.c.bf16 %v321_v3, %v319_v63  ;;  %v838_v11 = vpack.c.bf16 %v262_v4, %v260_v61 }
  0x30   :  { %v261_v9 = vld [vmem:[#allocation2 + $0x130] sm:$0xff]  ;;  %v264_v12 = vld [vmem:[#allocation2 + $0x148] sm:$0xff]  ;;  %v902_v13 = vpack.c.bf16 %v326_v6, %v324_v5  ;;  %v323_v14 = vld [vmem:[#allocation2 + $0x320] sm:$0xff] }
  0x31   :  { %889 = vmatpush1.bf16.msra.mxu1 %v888_v35  ;;  %v325_v15 = vld [vmem:[#allocation2 + $0x330] sm:$0xff]  ;;  %v266_v16 = vld [vmem:[#allocation2 + $0x158] sm:$0xff]  ;;  %v328_v17 = vld [vmem:[#allocation2 + $0x348] sm:$0xff]  ;;  %v840_v19 = vpack.c.bf16 %v261_v9, %v259_v8 }
  0x32   :  { %821 = vmatpush1.bf16.msra.mxu0 %v820_v20  ;;  %891 = vmatprep.subr.bf16.mxu1 %v890_v38  ;;  %v330_v18 = vld [vmem:[#allocation2 + $0x358] sm:$0xff]  ;;  %v263_v20 = vld [vmem:[#allocation2 + $0x140] sm:$0xff]  ;;  %v265_v21 = vld [vmem:[#allocation2 + $0x150] sm:$0xff]  ;;  %v904_v22 = vpack.c.bf16 %v325_v15, %v323_v14  ;;  %v842_v23 = vpack.c.bf16 %v266_v16, %v264_v12 }
  0x33   :  { %823 = vmatprep.subr.bf16.mxu0 %v822_v24  ;;  %v268_v24 = vld [vmem:[#allocation2 + $0x168] sm:$0xff]  ;;  %v906_v25 = vpack.c.bf16 %v330_v18, %v328_v17  ;;  %v327_v26 = vld [vmem:[#allocation2 + $0x340] sm:$0xff]  ;;  %v329_v27 = vld [vmem:[#allocation2 + $0x350] sm:$0xff]  ;;  %v844_v31 = vpack.c.bf16 %v265_v21, %v263_v20  ;;  %v206_v21 = vadd.s32 384, %v1093_v2 }
  0x34   :  { %v270_v28 = vld [vmem:[#allocation2 + $0x178] sm:$0xff]  ;;  %v332_v29 = vld [vmem:[#allocation2 + $0x368] sm:$0xff]  ;;  %v908_v33 = vpack.c.bf16 %v329_v27, %v327_v26  ;;  %v269_v35 = vld [vmem:[#allocation2 + $0x170] sm:$0xff]  ;;  %v1030_v27 = vmov 1.0  }
  0x35   :  { %893 = vmatpush1.bf16.msra.mxu1 %v892_v47  ;;  %v334_v30 = vld [vmem:[#allocation2 + $0x378] sm:$0xff]  ;;  %v846_v34 = vpack.c.bf16 %v270_v28, %v268_v24  ;;  %v331_v37 = vld [vmem:[#allocation2 + $0x360] sm:$0xff]  ;;  %v333_v38 = vld [vmem:[#allocation2 + $0x370] sm:$0xff]  ;;  %v205_v24 = vadd.s32 256, %v1093_v2  ;;  %v210_v26 = vcvt.s32.f32 %v206_v21 }
  0x36   :  { %825 = vmatpush1.bf16.msra.mxu0 %v824_v32  ;;  %895 = vmatprep.subr.bf16.mxu1 %v894_v50  ;;  %v267_v32 = vld [vmem:[#allocation2 + $0x160] sm:$0xff]  ;;  %v272_v39 = vld [vmem:[#allocation2 + $0x188] sm:$0xff]  ;;  %v274_v40 = vld [vmem:[#allocation2 + $0x198] sm:$0xff]  ;;  %v912_v42 = vpack.c.bf16 %v333_v38, %v331_v37 }
  0x37   :  { %827 = vmatprep.subr.bf16.mxu0 %v826_v36  ;;  %v910_v36 = vpack.c.bf16 %v334_v30, %v332_v29  ;;  %v848_v41 = vpack.c.bf16 %v269_v35, %v267_v32  ;;  %v850_v43 = vpack.c.bf16 %v274_v40, %v272_v39  ;;  %v273_v45 = vld [vmem:[#allocation2 + $0x190] sm:$0xff]  ;;  %v276_v46 = vld [vmem:[#allocation2 + $0x1a8] sm:$0xff]  ;;  %v278_v47 = vld [vmem:[#allocation2 + $0x1b8] sm:$0xff] }
  0x38   :  { %v854_v49 = vpack.c.bf16 %v278_v47, %v276_v46  ;;  %v275_v50 = vld [vmem:[#allocation2 + $0x1a0] sm:$0xff]  ;;  %v277_v51 = vld [vmem:[#allocation2 + $0x1b0] sm:$0xff]  ;;  %v280_v52 = vld [vmem:[#allocation2 + $0x1c8] sm:$0xff] }
  0x39   :  { %897 = vmatpush1.bf16.msra.mxu1 %v896_v59  ;;  %v282_v53 = vld [vmem:[#allocation2 + $0x1d8] sm:$0xff]  ;;  %v856_v54 = vpack.c.bf16 %v277_v51, %v275_v50  ;;  %v281_v57 = vld [vmem:[#allocation2 + $0x1d0] sm:$0xff]  ;;  %v284_v59 = vld [vmem:[#allocation2 + $0x1e8] sm:$0xff] }
  0x3a   :  { %829 = vmatpush1.bf16.msra.mxu0 %v828_v44  ;;  %899 = vmatprep.subr.bf16.mxu1 %v898_v62  ;;  %v271_v44 = vld [vmem:[#allocation2 + $0x180] sm:$0xff]  ;;  %v858_v55 = vpack.c.bf16 %v282_v53, %v280_v52  ;;  %v285_v63 = vld [vmem:[#allocation2 + $0x1f0] sm:$0xff]  ;;  %v336_v3 = vld [vmem:[#allocation2 + $0x388] sm:$0xff] }
  0x3b   :  { %831 = vmatprep.subr.bf16.mxu0 %v830_v48  ;;  %v852_v48 = vpack.c.bf16 %v273_v45, %v271_v44  ;;  %v283_v62 = vld [vmem:[#allocation2 + $0x1e0] sm:$0xff]  ;;  %v338_v5 = vld [vmem:[#allocation2 + $0x398] sm:$0xff]  ;;  %v341_v14 = vld [vmem:[#allocation2 + $0x3b0] sm:$0xff] }
  0x3c   :  { %v864_v4 = vpack.c.bf16 %v285_v63, %v283_v62  ;;  %v335_v6 = vld [vmem:[#allocation2 + $0x380] sm:$0xff]  ;;  %v914_v8 = vpack.c.bf16 %v338_v5, %v336_v3  ;;  %v520_v17 = vld [vmem:[%s1278_s4 + $0x88] sm:$0xff]  ;;  %v522_v32 = vld [vmem:[%s1278_s4 + $0x98] sm:$0xff] }
  0x3d   :  { %901 = vmatpush1.bf16.msra.mxu1 %v900_v10  ;;  %v340_v10 = vld [vmem:[#allocation2 + $0x3a8] sm:$0xff]  ;;  %v519_v16 = vld [vmem:[%s1278_s4 + $0x80] sm:$0xff]  ;;  %v505_v37 = vld [vmem:[%s1278_s4 + $0x10] sm:$0xff] }
  0x3e   :  { %833 = vmatpush1.bf16.msra.mxu0 %v832_v56  ;;  %903 = vmatprep.subr.bf16.mxu1 %v902_v13  ;;  %v279_v56 = vld [vmem:[#allocation2 + $0x1c0] sm:$0xff]  ;;  %v922_v18 = vpack.c.bf16 %v520_v17, %v519_v16  ;;  %v504_v29 = vld [vmem:[%s1278_s4 + $0x8] sm:$0xff]  ;;  %v506_v38 = vld [vmem:[%s1278_s4 + $0x18] sm:$0xff] }
  0x3f   :  { %835 = vmatprep.subr.bf16.mxu0 %v834_v60  ;;  %v860_v58 = vpack.c.bf16 %v281_v57, %v279_v56  ;;  %v286_v60 = vld [vmem:[#allocation2 + $0x1f8] sm:$0xff]  ;;  %v339_v13 = vld [vmem:[#allocation2 + $0x3a0] sm:$0xff]  ;;  %v524_v40 = vld [vmem:[%s1278_s4 + $0xa8] sm:$0xff] }
  0x40   :  { %v862_v61 = vpack.c.bf16 %v286_v60, %v284_v59  ;;  %v920_v15 = vpack.c.bf16 %v341_v14, %v339_v13  ;;  %v503_v28 = vld [vmem:[%s1278_s4] sm:$0xff]  ;;  %v508_v44 = vld [vmem:[%s1278_s4 + $0x28] sm:$0xff]  ;;  %v525_v45 = vld [vmem:[%s1278_s4 + $0xb0] sm:$0xff] }
  0x41   :  { %905 = vmatpush1.bf16.msra.mxu1 %v904_v22  ;;  %v207_v22 = vcvt.s32.f32 %v1093_v2  ;;  %v523_v39 = vld [vmem:[%s1278_s4 + $0xa0] sm:$0xff]  ;;  %v526_v46 = vld [vmem:[%s1278_s4 + $0xb8] sm:$0xff]  ;;  %v528_v52 = vld [vmem:[%s1278_s4 + $0xc8] sm:$0xff] }
  0x42   :  { %837 = vmatpush1.bf16.msra.mxu0 %v836_v7  ;;  %907 = vmatprep.subr.bf16.mxu1 %v906_v25  ;;  %v337_v7 = vld [vmem:[#allocation2 + $0x390] sm:$0xff]  ;;  %v510_v50 = vld [vmem:[%s1278_s4 + $0x38] sm:$0xff]  ;;  %v527_v51 = vld [vmem:[%s1278_s4 + $0xc0] sm:$0xff] }
  0x43   :  { %839 = vmatprep.subr.bf16.mxu0 %v838_v11  ;;  %v916_v9 = vpack.c.bf16 %v337_v7, %v335_v6  ;;  %v342_v11 = vld [vmem:[#allocation2 + $0x3b8] sm:$0xff]  ;;  %v512_v56 = vld [vmem:[%s1278_s4 + $0x48] sm:$0xff]  ;;  %v531_v3 = vld [vmem:[%s1278_s4 + $0xe0] sm:$0xff] }
  0x44   :  { %v918_v12 = vpack.c.bf16 %v342_v11, %v340_v10  ;;  %v530_v59 = vld [vmem:[%s1278_s4 + $0xd8] sm:$0xff]  ;;  %v515_v6 = vld [vmem:[%s1278_s4 + $0x60] sm:$0xff]  ;;  %v516_v7 = vld [vmem:[%s1278_s4 + $0x68] sm:$0xff] }
  0x45   :  { %909 = vmatpush1.bf16.msra.mxu1 %v908_v33  ;;  %v514_v62 = vld [vmem:[%s1278_s4 + $0x58] sm:$0xff]  ;;  %v614_v16 = vld [vmem:[%s1280_s6 + $0x8] sm:$0xff]  ;;  %v615_v17 = vld [vmem:[%s1280_s6 + $0x10] sm:$0xff] }
  0x46   :  { %841 = vmatpush1.bf16.msra.mxu0 %v840_v19  ;;  %911 = vmatprep.subr.bf16.mxu1 %v910_v36  ;;  %v204_v19 = vadd.s32 128, %v1093_v2  ;;  %v521_v2 = vld [vmem:[%s1278_s4 + $0x90] sm:$0xff]  ;;  %v534_v10 = vld [vmem:[%s1278_s4 + $0xf8] sm:$0xff] }
  0x47   :  { %843 = vmatprep.subr.bf16.mxu0 %v842_v23  ;;  %v926_v36 = vpack.c.bf16 %v522_v32, %v521_v2  ;;  %v518_v13 = vld [vmem:[%s1278_s4 + $0x78] sm:$0xff] }
  0x48   :  { %v208_v20 = vcvt.s32.f32 %v204_v19 }
  0x49   :  { %913 = vmatpush1.bf16.msra.mxu1 %v912_v42  ;;  %v930_v42 = vpack.c.bf16 %v524_v40, %v523_v39  ;;  %v619_v39 = vld [vmem:[%s1280_s6 + $0x30] sm:$0xff]  ;;  %v620_v40 = vld [vmem:[%s1280_s6 + $0x38] sm:$0xff] }
  0x4a   :  { %845 = vmatpush1.bf16.msra.mxu0 %v844_v31  ;;  %915 = vmatprep.subr.bf16.mxu1 %v914_v8  ;;  %v209_v31 = vcvt.s32.f32 %v205_v24  ;;  %v948_v8 = vpack.c.bf16 %v516_v7, %v515_v6  ;;  %v343_v24 = vld [vmem:[%s1277_s3] sm:$0x3] }
  0x4b   :  { %847 = vmatprep.subr.bf16.mxu0 %v846_v34  ;;  %v924_v34 = vpack.c.bf16 %v504_v29, %v503_v28 }
  0x4d   :  { %917 = vmatpush1.bf16.msra.mxu1 %v916_v9  ;;  %v533_v9 = vld [vmem:[%s1278_s4 + $0xf0] sm:$0xff] }
  0x4e   :  { %849 = vmatpush1.bf16.msra.mxu0 %v848_v41  ;;  %919 = vmatprep.subr.bf16.mxu1 %v918_v12  ;;  %v928_v41 = vpack.c.bf16 %v506_v38, %v505_v37  ;;  %v950_v11 = vpack.c.bf16 %v534_v10, %v533_v9  ;;  %v517_v12 = vld [vmem:[%s1278_s4 + $0x70] sm:$0xff]  ;;  %v618_v37 = vld [vmem:[%s1280_s6 + $0x28] sm:$0xff] }
  0x4f   :  { %851 = vmatprep.subr.bf16.mxu0 %v850_v43  ;;  %v507_v43 = vld [vmem:[%s1278_s4 + $0x20] sm:$0xff]  ;;  %v952_v14 = vpack.c.bf16 %v518_v13, %v517_v12 }
  0x50   :  { %v932_v47 = vpack.c.bf16 %v508_v44, %v507_v43  ;;  %v728_v43 = vld [vmem:[%s1279_s5] ss:$0 sm:$0xff] }
  0x51   :  { %921 = vmatpush1.bf16.msra.mxu1 %v920_v15  ;;  %v613_v15 = vld [vmem:[%s1280_s6] sm:$0xff] }
  0x52   :  { %853 = vmatpush1.bf16.msra.mxu0 %v852_v48  ;;  %923 = vmatprep.subr.bf16.mxu1 %v922_v18  ;;  %v934_v48 = vpack.c.bf16 %v526_v46, %v525_v45  ;;  %v1031_v18 = vmov 0.0|0.0   ;;  %v955_v19 = vpack.c.bf16 %v614_v16, %v613_v15 }
  0x53   :  { %855 = vmatprep.subr.bf16.mxu0 %v854_v49  ;;  %v509_v49 = vld [vmem:[%s1278_s4 + $0x30] sm:$0xff] }
  0x54   :  { %v936_v53 = vpack.c.bf16 %v510_v50, %v509_v49 }
  0x56   :  { %857 = vmatpush1.bf16.msra.mxu0 %v856_v54  ;;  %v938_v54 = vpack.c.bf16 %v528_v52, %v527_v51 }
  0x57   :  { %859 = vmatprep.subr.bf16.mxu0 %v858_v55  ;;  %v511_v55 = vld [vmem:[%s1278_s4 + $0x40] sm:$0xff] }
  0x58   :  { %v940_v57 = vpack.c.bf16 %v512_v56, %v511_v55 }
  0x5a   :  { %861 = vmatpush1.bf16.msra.mxu0 %v860_v58  ;;  %v529_v58 = vld [vmem:[%s1278_s4 + $0xd0] sm:$0xff] }
  0x5b   :  { %863 = vmatprep.subr.bf16.mxu0 %v862_v61  ;;  %v942_v60 = vpack.c.bf16 %v530_v59, %v529_v58  ;;  %v513_v61 = vld [vmem:[%s1278_s4 + $0x50] sm:$0xff] }
  0x5c   :  { %v944_v63 = vpack.c.bf16 %v514_v62, %v513_v61 }
  0x5e   :  { %865 = vmatpush1.bf16.msra.mxu0 %v864_v4  ;;  %v532_v4 = vld [vmem:[%s1278_s4 + $0xe8] sm:$0xff] }
  0x5f   :  { %v946_v5 = vpack.c.bf16 %v532_v4, %v531_v3  ;;  %954 = vmatprep.subr.bf16.mxu0 %v1031_v18 }
  0xf0   :  { %v128_v23 = vpop.f32.mrb[0].mxu0 }
  0xf1   :  { %v130_v25 = vpop.f32.mrb[1].mxu0  ;;  %vm211_vm2 = vcmp.eq.f32.partialorder %v128_v23, %v207_v22  ;;  %v346_v22 = vshrl.u32 %v45_v0, 7  ;;  %v617_v0 = vld [vmem:[%s1280_s6 + $0x20] sm:$0xff] }
  0xf2   :  { %vm212_vm1 = vcmp.eq.f32.partialorder %v130_v25, %v208_v20  ;;  %v616_v20 = vld [vmem:[%s1280_s6 + $0x18] sm:$0xff]  ;;  %v961_v38 = vpack.c.bf16 %v618_v37, %v617_v0  ;;  %s1033_s6 = smov [#allocation5]  }
  0xf3   :  { %724 = vmatprep.mubr.msk.f32.mxu0 %vm212_vm1, %v1030_v27  ;;  %v958_v21 = vpack.c.bf16 %v616_v20, %v615_v17  ;;  %v347_v23 = vsub.s32 0, %v346_v22  ;;  %v351_v25 = vsub.s32 1, %v346_v22  ;;  %s709_s21 = sshll.u32 %s1033_s6, 4  ;;  %s710_s21 = int_to_ptr.vmem [resolvable:$true] %s709_s21 }
  0xf4   :  { %v199_v30 = vpop.f32.mrb[2].mxu0  ;;  %725 = vmatmul.mubr.msk.f32.vlgmr.msra.gmra.mrb[4].mxu0 %vm211_vm2, %v1030_v27  ;;  %s1000_s22 = scalar_lea.vmem %s710_s21, 128  ;;  %p1005_p9 = scmp.lt.s32.totalorder %s710_s21, %s710_s21 }
  0xf5   :  { %v201_v33 = vpop.f32.mrb[3].mxu0  ;;  %vm213_vm5 = vcmp.eq.f32.partialorder %v199_v30, %v209_v31  ;;  %956 = vmatpush3.bf16.msra.mxu0 %v955_v19  ;;  %v352_v28 = vrot.slane %v343_v24, %v351_v25  ;;  %791 = vmatprep.mubr.msk.f32.mxu0 %vm1032_vm6, %v1029_v1  ;;  %p1001_p8 = scmp.ne.s32.totalorder %s710_s21, %s1000_s22  ;;  %p1006_p10 = scmp.lt.s32.totalorder %s1000_s22, %s1000_s22 }
  0xf6   :  { %vm214_vm4 = vcmp.eq.f32.partialorder %v201_v33, %v210_v26  ;;  %957 = vmatprep.subr.bf16.mxu0 %v1031_v18  ;;  %v348_v26 = vrot.slane %v343_v24, %v347_v23 }
  0xf7   :  { %v723_v35 = vsel %vm214_vm4, 1.0, %v1029_v1  ;;  %p1007_p11 = por %p1006_p10, %p1005_p9 }
  0xf8   :  { %726 = vmatprep.mubr.msk.f32.mxu1 %vm355_vm3, %v723_v35 }
  0xf9   :  { %727 = vmatmul.mubr.msk.f32.vlgmr.msra.gmra.mrb[0].mxu1 %vm213_vm5, %v1030_v27  ;;  %959 = vmatpush3.bf16.msra.mxu0 %v958_v21  ;;  %p1008_p12 = pnand %p1007_p11, %p1001_p8 }
  0xfa   :  { %925 = vmatpush3.bf16.msra.mxu1 %v924_v34  ;;  %960 = vmatprep.subr.bf16.mxu0 %v1031_v18 }
  0xfb   :  { %927 = vmatprep.subr.bf16.mxu1 %v926_v36 }
  0xfd   :  { %962 = vmatpush3.bf16.msra.mxu0 %v961_v38 }
  0xfe   :  { %929 = vmatpush3.bf16.msra.mxu1 %v928_v41  ;;  %963 = vmatprep.subr.bf16.mxu0 %v1031_v18  ;;  %v964_v41 = vpack.c.bf16 %v620_v40, %v619_v39 }
  0xff   :  { %931 = vmatprep.subr.bf16.mxu1 %v930_v42 }
 0x101   :  { %965 = vmatpush3.bf16.msra.mxu0 %v964_v41 }
 0x102   :  { %933 = vmatpush3.bf16.msra.mxu1 %v932_v47 }
 0x103   :  { %935 = vmatprep.subr.bf16.mxu1 %v934_v48  ;;  %v729_v48 = vld [vmem:[%s1281_s7] ss:$0 sm:$0xff] }
 0x106   :  { %937 = vmatpush3.bf16.msra.mxu1 %v936_v53 }
 0x107   :  { %939 = vmatprep.subr.bf16.mxu1 %v938_v54 }
 0x10a   :  { %941 = vmatpush3.bf16.msra.mxu1 %v940_v57 }
 0x10b   :  { %943 = vmatprep.subr.bf16.mxu1 %v942_v60 }
 0x10e   :  { %945 = vmatpush3.bf16.msra.mxu1 %v944_v63 }
 0x10f   :  { %947 = vmatprep.subr.bf16.mxu1 %v946_v5 }
 0x112   :  { %949 = vmatpush3.bf16.msra.mxu1 %v948_v8 }
 0x113   :  { %951 = vmatprep.subr.bf16.mxu1 %v950_v11 }
 0x116   :  { %953 = vmatpush3.bf16.msra.mxu1 %v952_v14 }
 0x1c7   :  { %v425_v27 = vpop.f32.mrb[4].mxu0 }
 0x1c8   :  { %v427_v29 = vpop.f32.mrb[5].mxu0  ;;  %v426_v30 = vadd.f32 %v425_v27, %v348_v26 }
 0x1c9   :  { %v428_v31 = vadd.f32 %v427_v29, %v352_v28 }
 0x1cc   :  { %v496_v2 = vpop.f32.mrb[0].mxu1 }
 0x1cd   :  { %v497_v32 = vadd.f32 %v496_v2, %v426_v30  ;;  %v498_v33 = vpop.f32.mrb[1].mxu1 }
 0x1ce   :  { %v499_v34 = vadd.f32 %v498_v33, %v428_v31 }
 0x1cf   :  { %v501_v36 = vmax.f32 %v497_v32, 0.0 }
 0x1d0   :  { %v502_v35 = vmax.f32 %v499_v34, 0.0 }
 0x1d2   :  { %606 = vmatprep.mubr.f32.mxu1 %v502_v35 }
 0x1d3   :  { %607 = vmatmul.mubr.f32.vlgmr.msra.gmra.mrb[2].mxu1 %v501_v36 }
 0x2a6   :  { %v763_v42 = vpop.f32.mrb[2].mxu1 }
 0x2a7   :  { %v764_v44 = vpop.f32.mrb[3].mxu1 }
 0x2a8   :  { %v765_v45 = vadd.f32 %v764_v44, %v763_v42 }
 0x2aa   :  { %v609_v46 = vadd.f32 %v765_v45, %v728_v43 }
 0x2ac   :  { %v612_v47 = vmax.f32 %v609_v46, 0.0 }
 0x2ae   :  { %792 = vmatmul.mubr.msk.f32.vlgmr.msra.gmra.mrb[6].mxu0 %vm628_vm7, %v612_v47 }
 0x381   :  { %v698_v49 = vpop.f32.mrb[6].mxu0 }
 0x382   :  { %v699_v50 = vadd.f32 %v729_v48, %v698_v49  ;;  %v793_v1 = vpop.f32.mrb[7].mxu0 }
 0x384   :  { %702 = vst [vmem:[#allocation5] sm:$0xff] %v699_v50 }
 0x385   :  { %1011 = shalt.err (!%p1008_p12)
}
 0x386   :  { %s1012_s23 = scalar_lea.hbm %s1282_s8, 128 }
 0x387   :  { %p1013_p13 = scmp.ne.s32.totalorder %s1282_s8, %s1012_s23  ;;  %p1016_p0 = scmp.lt.u32.totalorder %s1012_s23, %s1282_s8 }
 0x389   :  { %p1018_p1 = pnand %p1016_p0, %p1013_p13 }
 0x38b   :  { %1021 = shalt.err (!%p1018_p1)
}
 0x38c   :  { %712 = dma.vmem_to_hbm [thread:$0]  %s710_s21, 128, %s1282_s8, [#allocation4]  }
 0x38d   :  { %1024 = dma.done.wait [#allocation4], 128  }
 0x38e   :  { %1025 = vsyncadd [#allocation4], 4294967168 }
 0x38f   :  { %716 = vsyncpa [#allocation3], 1 }
 0x390   :  { %717 = vsyncpa [#allocation4], 1 }

</bundles_post_ra>
